<compile_context>
chip_gen: v5e
topology: v5e:2x2
jax: 0.10.0
libtpu: 0.0.40
codegen_flags: <defaults>
</compile_context>

<pallas_src>
import functools

import jax
import jax.numpy as jnp
from jax.experimental import pallas as pl
from jax.experimental.pallas import tpu as pltpu


def _round_up(x, m):
    return ((x + m - 1) // m) * m


def _bce_loss_kernel(x_ref, y_ref, out_ref, acc_ref, *,
                     pos_weight, inv_count, tile_rows, total_rows, needs_mask):
    """Weighted BCE-with-logits streaming mean kernel.

    x_ref  : (tile_rows, N) logits tile (any float dtype; cast to f32 in-kernel)
    y_ref  : (tile_rows, N) labels tile (int8 / bf16 / f32; cast to f32 in-kernel)
    out_ref: (8, 128) f32 lane-dense output slab (mean broadcast into it, last step)
    acc_ref: (1, N) f32 running per-lane-column partial sum (VMEM scratch)
    """
    i = pl.program_id(0)

    @pl.when(i == 0)
    def _():
        acc_ref[...] = jnp.zeros_like(acc_ref)

    x = x_ref[...].astype(jnp.float32)
    y = y_ref[...].astype(jnp.float32)

    # Numerically stable softplus(-x) = max(-x, 0) + log(1 + exp(-|x|)).
    sp_neg = jnp.maximum(-x, 0.0) + jnp.log(1.0 + jnp.exp(-jnp.abs(x)))
    # pw*y*softplus(-x) + (1-y)*softplus(x) == (1-y)*x + (1 + (pw-1)*y)*softplus(-x)
    w = 1.0 + (pos_weight - 1.0) * y
    loss = (1.0 - y) * x + w * sp_neg

    def _accumulate(vals):
        # Per-step reduce to one (1, N) row: vreg adds + sublane reduce (XLU),
        # instead of a full (tile_rows, N) accumulator load/store per step.
        acc_ref[...] += jnp.sum(vals, axis=0, keepdims=True)

    if needs_mask:  # static Python bool: only traced when rows % tile_rows != 0
        row0 = i * tile_rows
        is_tail = row0 + tile_rows > total_rows

        @pl.when(jnp.logical_not(is_tail))
        def _():
            _accumulate(loss)

        @pl.when(is_tail)
        def _():
            # The out-of-bounds tail region of the tile holds arbitrary data;
            # the select below drops it (select does not propagate NaN/Inf).
            rows = jax.lax.broadcasted_iota(jnp.int32, loss.shape, 0) + row0
            _accumulate(jnp.where(rows < total_rows, loss, 0.0))
    else:
        _accumulate(loss)

    @pl.when(i == pl.num_programs(0) - 1)
    def _():
        mean = jnp.sum(acc_ref[...]) * inv_count
        out_ref[...] = jnp.broadcast_to(mean, out_ref.shape).astype(jnp.float32)


def bce_with_logits_loss(logits, labels, pos_weight=10.0, *, tile_rows=None):
    """Mean BCE-with-logits loss with scalar pos_weight, computed via Pallas.

    logits/labels: arrays of identical shape (labels may be int8/bf16/float).
    Returns a scalar float32.
    """
    assert logits.shape == labels.shape, (logits.shape, labels.shape)
    total = 1
    for d in logits.shape:
        total *= d

    # ---- 2-D, lane-dense view (no padding, no extra HBM copy). ----
    if logits.ndim >= 2:
        n = logits.shape[-1]
        rows = total // n
    else:
        rows, n = 1, total
    if n % 128 != 0 and total % 128 == 0:
        rows, n = total // 128, 128          # row-major reshape: free repack
    logits2 = logits.reshape(rows, n)
    labels2 = labels.reshape(rows, n)

    # ---- Tile sizing: ~4 MiB of f32 logits per tile, multiple of 32 rows
    # (f32/bf16/int8 sublane tiling), or the full row count if smaller. ----
    if tile_rows is None:
        tile_rows = (4 << 20) // max(1, n * 4)
    tile_rows = max(32, min(8192, int(tile_rows)))
    tile_rows = _round_up(tile_rows, 32)
    if tile_rows >= rows:
        tile_rows = rows                     # single block; block dims == array dims
    num_blocks = pl.cdiv(rows, tile_rows)
    needs_mask = (rows % tile_rows) != 0

    kernel = functools.partial(
        _bce_loss_kernel,
        pos_weight=float(pos_weight),
        inv_count=1.0 / float(total),
        tile_rows=tile_rows,
        total_rows=rows,
        needs_mask=needs_mask,
    )

    # Footprint: 2x double-buffered logits + labels tiles + tiny acc/out.
    x_bytes = jnp.dtype(logits2.dtype).itemsize
    y_bytes = jnp.dtype(labels2.dtype).itemsize
    est_vmem = 2 * tile_rows * n * (x_bytes + y_bytes) + (1 << 20)
    vmem_limit = int(min(64 << 20, max(32 << 20, 2 * est_vmem)))

    out = pl.pallas_call(
        kernel,
        out_shape=jax.ShapeDtypeStruct((8, 128), jnp.float32),
        grid_spec=pltpu.PrefetchScalarGridSpec(
            num_scalar_prefetch=0,
            grid=(num_blocks,),
            in_specs=[
                pl.BlockSpec((tile_rows, n), lambda i: (i, 0)),   # logits
                pl.BlockSpec((tile_rows, n), lambda i: (i, 0)),   # labels
            ],
            out_specs=pl.BlockSpec((8, 128), lambda i: (0, 0)),
            scratch_shapes=[pltpu.VMEM((1, n), jnp.float32)],
        ),
        compiler_params=pltpu.CompilerParams(
            dimension_semantics=("arbitrary",),
            vmem_limit_bytes=vmem_limit,
        ),
    )(logits2, labels2)

    return out[0, 0]


class BaseModelPallas:
    """JAX/Pallas analogue of lb.model.base_model.BaseModel."""

    def __init__(self, pos_weight=(10.0,)):
        # The reference module's pos_weight is a 1-element list broadcast over
        # every label; bake it into the kernel as a scalar constant.
        # TODO(synk): per-label pos_weight vectors would need an extra (1, N) input.
        self.pos_weight = float(pos_weight[0])

    def forward(self, batch):
        # TODO(synk): forward() is @abstractmethod in the PyTorch module; pass
        # the precomputed logits through unchanged.
        return {"logits": batch["logits"]}

    def calculate_loss(self, batch):
        output = self.forward(batch)
        labels = batch["labels"]
        # Hard (bool/int) labels stream as int8 (1 B/elem in HBM, exact 0/1);
        # float (possibly soft) targets keep their dtype.  Kernel casts to f32.
        if not jnp.issubdtype(labels.dtype, jnp.floating):
            labels = labels.astype(jnp.int8)
        output["loss"] = bce_with_logits_loss(output["logits"], labels,
                                              self.pos_weight)
        return output


def _reference_loss(logits, labels, pos_weight):
    """Pure-JAX reference matching torch.nn.BCEWithLogitsLoss(pos_weight) semantics."""
    x = logits.astype(jnp.float32)
    y = labels.astype(jnp.float32)
    pw = jnp.float32(pos_weight)
    log_term = jnp.log1p(jnp.exp(-jnp.abs(x)))
    sp_neg = jnp.maximum(-x, 0.0) + log_term
    sp_pos = jnp.maximum(x, 0.0) + log_term
    return jnp.mean(pw * y * sp_neg + (1.0 - y) * sp_pos)


if __name__ == "__main__":
    key = jax.random.PRNGKey(0)
    k1, k2, k3, k4 = jax.random.split(key, 4)

    # --- Primary check: small multi-label shapes (batch=16, num_labels=128). ---
    B, N = 16, 128
    logits = jax.random.normal(k1, (B, N), dtype=jnp.float32) * 2.0
    labels = jax.random.uniform(k2, (B, N)) < 0.1            # hard bool labels

    model = BaseModelPallas(pos_weight=[10.0])
    output = model.calculate_loss({"logits": logits, "labels": labels})
    loss = jax.block_until_ready(output["loss"])
    ref = _reference_loss(logits, labels.astype(jnp.float32), 10.0)
    assert jnp.allclose(loss, ref, rtol=1e-5, atol=1e-5), (loss, ref)

    # --- Tail-mask path: rows not divisible by the tile size. ---
    B2, N2 = 50, 128
    logits2 = jax.random.normal(k3, (B2, N2), dtype=jnp.float32) * 3.0
    labels2 = (jax.random.uniform(k4, (B2, N2)) < 0.3).astype(jnp.int8)
    loss2 = jax.block_until_ready(
        bce_with_logits_loss(logits2, labels2, 10.0, tile_rows=32))
    ref2 = _reference_loss(logits2, labels2, 10.0)
    assert jnp.allclose(loss2, ref2, rtol=1e-5, atol=1e-5), (loss2, ref2)

    # --- Lane-dense repack path: last dim not a multiple of 128. ---
    B3, N3 = 16, 64
    logits3 = jax.random.normal(k1, (B3, N3), dtype=jnp.float32)
    labels3 = (jax.random.uniform(k2, (B3, N3)) < 0.5).astype(jnp.int8)
    loss3 = jax.block_until_ready(bce_with_logits_loss(logits3, labels3, 10.0))
    ref3 = _reference_loss(logits3, labels3, 10.0)
    assert jnp.allclose(loss3, ref3, rtol=1e-5, atol=1e-5), (loss3, ref3)

    print("KERNEL_OK")
</pallas_src>

<mosaic_0001>
module attributes {stable_mosaic.version = 11 : i64} {
  func.func @_bce_loss_kernel(%arg0: i32, %arg1: memref<16x128xf32, #tpu.memory_space<vmem>>, %arg2: memref<16x128xi8, #tpu.memory_space<vmem>>, %arg3: memref<8x128xf32, #tpu.memory_space<vmem>>, %arg4: memref<1x128xf32, #tpu.memory_space<vmem>>) attributes {dimension_semantics = [#tpu.dimension_semantics<arbitrary>], iteration_bounds = array<i64: 1>, scalar_prefetch = 0 : i64, scratch_operands = 1 : i64, tpu.core_type = #tpu.core_type<tc>, window_params = [{transform_indices = @transform_0, window_bounds = array<i64: 16, 128>}, {transform_indices = @transform_1, window_bounds = array<i64: 16, 128>}, {pipeline_mode = #tpu.pipeline_mode<synchronous>, transform_indices = @transform_2, window_bounds = array<i64: 8, 128>}]} {
    %c0_i32 = arith.constant 0 : i32
    %0 = arith.cmpi eq, %arg0, %c0_i32 : i32
    %1 = arith.extui %0 : i1 to i32
    %c0_i32_0 = arith.constant 0 : i32
    %2 = arith.cmpi ne, %1, %c0_i32_0 : i32
    scf.if %2 {
      %cst_17 = arith.constant 0.000000e+00 : f32
      %35 = vector.broadcast %cst_17 : f32 to vector<1x128xf32>
      %c0_18 = arith.constant 0 : index
      %c0_19 = arith.constant 0 : index
      %36 = vector.load %arg4[%c0_18, %c0_19] : memref<1x128xf32, #tpu.memory_space<vmem>>, vector<1x128xf32>
      tpu.vector_store %arg4[%c0_18, %c0_19], %35 {strides = array<i32>} : memref<1x128xf32, #tpu.memory_space<vmem>>, vector<1x128xf32>,
    } else {
    }
    %c0 = arith.constant 0 : index
    %c0_1 = arith.constant 0 : index
    %3 = vector.load %arg1[%c0, %c0_1] : memref<16x128xf32, #tpu.memory_space<vmem>>, vector<16x128xf32>
    %c0_2 = arith.constant 0 : index
    %c0_3 = arith.constant 0 : index
    %4 = vector.load %arg2[%c0_2, %c0_3] : memref<16x128xi8, #tpu.memory_space<vmem>>, vector<16x128xi8>
    %5 = arith.sitofp %4 : vector<16x128xi8> to vector<16x128xf32>
    %cst = arith.constant 0.000000e+00 : f32
    %6 = vector.broadcast %cst : f32 to vector<16x128xf32>
    %7 = arith.subf %6, %3 : vector<16x128xf32>
    %cst_4 = arith.constant 0.000000e+00 : f32
    %8 = vector.broadcast %cst_4 : f32 to vector<16x128xf32>
    %9 = arith.maximumf %7, %8 : vector<16x128xf32>
    %10 = math.absf %3 : vector<16x128xf32>
    %cst_5 = arith.constant 0.000000e+00 : f32
    %11 = vector.broadcast %cst_5 : f32 to vector<16x128xf32>
    %12 = arith.subf %11, %10 : vector<16x128xf32>
    %13 = math.exp %12 : vector<16x128xf32>
    %cst_6 = arith.constant 1.000000e+00 : f32
    %14 = vector.broadcast %cst_6 : f32 to vector<16x128xf32>
    %15 = arith.addf %14, %13 : vector<16x128xf32>
    %16 = math.log %15 : vector<16x128xf32>
    %17 = arith.addf %9, %16 : vector<16x128xf32>
    %cst_7 = arith.constant 9.000000e+00 : f32
    %18 = vector.broadcast %cst_7 : f32 to vector<16x128xf32>
    %19 = arith.mulf %18, %5 : vector<16x128xf32>
    %cst_8 = arith.constant 1.000000e+00 : f32
    %20 = vector.broadcast %cst_8 : f32 to vector<16x128xf32>
    %21 = arith.addf %20, %19 : vector<16x128xf32>
    %cst_9 = arith.constant 1.000000e+00 : f32
    %22 = vector.broadcast %cst_9 : f32 to vector<16x128xf32>
    %23 = arith.subf %22, %5 : vector<16x128xf32>
    %24 = arith.mulf %23, %3 : vector<16x128xf32>
    %25 = arith.mulf %21, %17 : vector<16x128xf32>
    %26 = arith.addf %24, %25 : vector<16x128xf32>
    %c0_10 = arith.constant 0 : index
    %c0_11 = arith.constant 0 : index
    %27 = vector.load %arg4[%c0_10, %c0_11] : memref<1x128xf32, #tpu.memory_space<vmem>>, vector<1x128xf32>
    %cst_12 = arith.constant dense<0.000000e+00> : vector<128xf32>
    %28 = vector.multi_reduction <add>, %26, %cst_12 [0] : vector<16x128xf32> to vector<128xf32>
    %29 = vector.shape_cast %28 : vector<128xf32> to vector<1x128xf32>
    %30 = arith.addf %27, %29 : vector<1x128xf32>
    %c0_13 = arith.constant 0 : index
    %c0_14 = arith.constant 0 : index
    %31 = vector.load %arg4[%c0_13, %c0_14] : memref<1x128xf32, #tpu.memory_space<vmem>>, vector<1x128xf32>
    tpu.vector_store %arg4[%c0_13, %c0_14], %30 {strides = array<i32>} : memref<1x128xf32, #tpu.memory_space<vmem>>, vector<1x128xf32>,
    %c0_i32_15 = arith.constant 0 : i32
    %32 = arith.cmpi eq, %arg0, %c0_i32_15 : i32
    %33 = arith.extui %32 : i1 to i32
    %c0_i32_16 = arith.constant 0 : i32
    %34 = arith.cmpi ne, %33, %c0_i32_16 : i32
    scf.if %34 {
      %c0_17 = arith.constant 0 : index
      %c0_18 = arith.constant 0 : index
      %35 = vector.load %arg4[%c0_17, %c0_18] : memref<1x128xf32, #tpu.memory_space<vmem>>, vector<1x128xf32>
      %36 = vector.shape_cast %35 : vector<1x128xf32> to vector<1x1x128xf32>
      %cst_19 = arith.constant dense<0.000000e+00> : vector<1xf32>
      %37 = vector.multi_reduction <add>, %36, %cst_19 [1, 2] : vector<1x1x128xf32> to vector<1xf32>
      %38 = vector.shape_cast %37 : vector<1xf32> to vector<1x1x1xf32>
      %39 = vector.extract %38[0, 0, 0] : f32 from vector<1x1x1xf32>
      %cst_20 = arith.constant 4.8828125E-4 : f32
      %40 = arith.mulf %39, %cst_20 : f32
      %41 = vector.broadcast %40 : f32 to vector<8x128xf32>
      %c0_21 = arith.constant 0 : index
      %c0_22 = arith.constant 0 : index
      %42 = vector.load %arg3[%c0_21, %c0_22] : memref<8x128xf32, #tpu.memory_space<vmem>>, vector<8x128xf32>
      tpu.vector_store %arg3[%c0_21, %c0_22], %41 {strides = array<i32>} : memref<8x128xf32, #tpu.memory_space<vmem>>, vector<8x128xf32>,
    } else {
    }
    return
  }
  func.func @transform_0(%arg0: i32) -> (i32, i32) {
    %c0_i32 = arith.constant 0 : i32
    %c0_i32_0 = arith.constant 0 : i32
    return %arg0, %c0_i32 : i32, i32
  }
  func.func @transform_1(%arg0: i32) -> (i32, i32) {
    %c0_i32 = arith.constant 0 : i32
    %c0_i32_0 = arith.constant 0 : i32
    return %arg0, %c0_i32 : i32, i32
  }
  func.func @transform_2(%arg0: i32) -> (i32, i32) {
    %c0_i32 = arith.constant 0 : i32
    %c0_i32_0 = arith.constant 0 : i32
    %c0_i32_1 = arith.constant 0 : i32
    return %c0_i32, %c0_i32_0 : i32, i32
  }
}

</mosaic_0001>

<bundles_post_ra>
// kernel: tpu_custom_call.1
= control target key start
LH: loop header
LB: loop body
LE: loop exit
PB: predicated region body
PF: predicated region fallthrough
CT: control target
= control target key end

     0   :  { %7 = vsyncpa [#allocation4], 0  ;;  %s267_s0 = inlined_call_operand.hbm [shape: f32[16,128], index: 0, kind: input, shape index: {}]   ;;  %s268_s1 = inlined_call_operand.hbm [shape: s8[16,128], index: 1, kind: input, shape index: {}]   ;;  %s269_s2 = inlined_call_operand.hbm [shape: f32[8,128], index: 2, kind: output, shape index: {}]  }
   0x1   :  { %8 = vsyncpa [#allocation7], 0 }
   0x2   :  { %9 = vsyncpa [#allocation5], 0  ;;  %s14_s11 = sshll.u32 %s267_s0, 4  ;;  %s235_s12 = smov [#allocation3]   ;;  %s15_s11 = int_to_ptr.hbm [resolvable:$true] %s14_s11 }
   0x3   :  { %s16_s13 = sshll.u32 %s235_s12, 4  ;;  %s27_s16 = sshll.u32 %s268_s1, 4  ;;  %s17_s13 = int_to_ptr.vmem [resolvable:$true] %s16_s13  ;;  %s28_s16 = int_to_ptr.hbm [resolvable:$true] %s27_s16 }
   0x4   :  { %s236_s17 = smov 128   ;;  %s237_s18 = smov 8  }
   0x5   :  { %22 = dma.hbm_to_vmem [thread:$0]  %s15_s11, 256, %s17_s13, [#allocation4], %s236_s17, %s236_s17, %s237_s18  }
   0x6   :  { %s238_s19 = smov [#allocation6]   ;;  %s239_s21 = smov 32  }
   0x7   :  { %s29_s20 = sshll.u32 %s238_s19, 4  ;;  %s240_s22 = smov 2   ;;  %s30_s20 = int_to_ptr.vmem [resolvable:$true] %s29_s20 }
   0x8   :  { %35 = dma.hbm_to_vmem [thread:$0]  %s28_s16, 64, %s30_s20, [#allocation7], %s239_s21, %s239_s21, %s240_s22  }
   0x9   :  { %229 = dma.done.wait [#allocation4], 256  }
   0xa   :  { %230 = vsyncadd [#allocation4], 4294967040 }
   0xb   :  { %231 = dma.done.wait [#allocation7], 64  }
   0xc   :  { %232 = vsyncadd [#allocation7], 4294967232  ;;  %v241_v0 = vmov 0.0   ;;  %v49_v1 = vld [vmem:[#allocation3] sm:$0xff]  ;;  %v50_v2 = vld [vmem:[#allocation3 + $0x8] sm:$0xff]  ;;  %vm103_vm0 = vcmask 1040384  }
   0xd   :  { %48 = vst [vmem:[#allocation2] sm:$0x1] %v241_v0  ;;  %v61_v3 = vand.u32 2147483647, %v49_v1  ;;  %v62_v4 = vand.u32 2147483647, %v50_v2 }
   0xe   :  { %v136_v9 = vld [vmem:[#allocation6] sm:$0xf]   ;;  %v57_v18 = vsub.f32 0.0, %v49_v1  ;;  %v58_v19 = vsub.f32 0.0, %v50_v2  ;;  %s242_s0 = smov [#allocation8]   ;;  %s124_s25 = sshll.u32 %s269_s2, 4  ;;  %s125_s25 = int_to_ptr.hbm [resolvable:$true] %s124_s25 }
   0xf   :  { %v63_v5 = vsub.f32 0.0, %v61_v3  ;;  %v64_v6 = vsub.f32 0.0, %v62_v4  ;;  %v137_v10 = vunpack.c.0.s8 %v136_v9  ;;  %v138_v11 = vunpack.c.1.s8 %v136_v9  ;;  %s122_s1 = sshll.u32 %s242_s0, 4  ;;  %s123_s1 = int_to_ptr.vmem [resolvable:$true] %s122_s1 }
  0x10   :  { %v59_v22 = vmax.f32 %v57_v18, 0.0  ;;  %v60_v25 = vmax.f32 %v58_v19, 0.0 }
  0x11   :  { %v65_v7 = vmul.f32 1.442695, %v63_v5  ;;  %v67_v8 = vmul.f32 1.442695, %v64_v6  ;;  %v55_v15 = vcvt.s32.f32 %v137_v10  ;;  %v56_v17 = vcvt.s32.f32 %v138_v11 }
  0x13   :  { %149 = vpow2.f32 %v65_v7  ;;  %v77_v20 = vmul.f32 9.0, %v55_v15  ;;  %v78_v21 = vmul.f32 9.0, %v56_v17  ;;  %v81_v23 = vsub.f32 1.0, %v55_v15 }
  0x14   :  { %151 = vpow2.f32 %v67_v8  ;;  %v82_v26 = vsub.f32 1.0, %v56_v17  ;;  %v89_v46 = vld [vmem:[#allocation2] sm:$0x1] }
  0x15   :  { %v79_v29 = vadd.f32 1.0, %v77_v20  ;;  %v80_v31 = vadd.f32 1.0, %v78_v21  ;;  %v83_v33 = vmul.f32 %v81_v23, %v49_v1 }
  0x16   :  { %v84_v35 = vmul.f32 %v82_v26, %v50_v2 }
  0x19   :  { %v150_v12 = vpop.eup %149 }
  0x1a   :  { %v152_v13 = vpop.eup %151  ;;  %v69_v14 = vadd.f32 1.0, %v150_v12 }
  0x1b   :  { %v70_v16 = vadd.f32 1.0, %v152_v13 }
  0x1c   :  { %153 = vlog2.f32 %v69_v14 }
  0x1d   :  { %155 = vlog2.f32 %v70_v16 }
  0x22   :  { %v154_v24 = vpop.eup %153 }
  0x23   :  { %v156_v27 = vpop.eup %155  ;;  %v72_v28 = vmul.f32 0.6931472, %v154_v24 }
  0x24   :  { %v74_v30 = vmul.f32 0.6931472, %v156_v27 }
  0x25   :  { %v75_v32 = vadd.f32 %v72_v28, %v59_v22 }
  0x26   :  { %v76_v34 = vadd.f32 %v74_v30, %v60_v25 }
  0x27   :  { %v85_v36 = vmul.f32 %v79_v29, %v75_v32 }
  0x28   :  { %v86_v37 = vmul.f32 %v80_v31, %v76_v34 }
  0x29   :  { %v87_v38 = vadd.f32 %v85_v36, %v83_v33 }
  0x2a   :  { %v88_v39 = vadd.f32 %v86_v37, %v84_v35 }
  0x2c   :  { %v90_v40 = vadd.f32 %v88_v39, %v87_v38 }
  0x2e   :  { %v91_v41 = vrot.slane %v90_v40, 4 }
  0x30   :  { %v92_v42 = vadd.f32 %v91_v41, %v90_v40 }
  0x32   :  { %v93_v43 = vrot.slane %v92_v42, 2 }
  0x34   :  { %v94_v44 = vadd.f32 %v93_v43, %v92_v42 }
  0x36   :  { %v95_v45 = vrot.slane %v94_v44, 1 }
  0x38   :  { %v96_v47 = vadd.f32 %v95_v45, %v94_v44 }
  0x3a   :  { %v97_v48 = vadd.f32 %v96_v47, %v89_v46 }
  0x3c   :  { %98 = vst [vmem:[#allocation2] sm:$0x1] %v97_v48 }
  0x43   :  { %v102_v49 = vld [vmem:[#allocation2] sm:$0x1] }
  0x44   :  { %v104_v50 = vsel %vm103_vm0, %v102_v49, 0.0 }
  0x45   :  { %105 = vadd.xlane.f32.xlu0 %v104_v50 }
  0xb8   :  { %v106_v51 = vpop.xlane.xlu0 %105 }
  0xb9   :  { %v107_v52 = vrot.slane %v106_v51, 4 }
  0xbb   :  { %v108_v53 = vadd.f32 %v107_v52, %v106_v51 }
  0xbd   :  { %v109_v54 = vrot.slane %v108_v53, 2 }
  0xbf   :  { %v110_v55 = vadd.f32 %v109_v54, %v108_v53 }
  0xc1   :  { %v111_v56 = vrot.slane %v110_v55, 1 }
  0xc3   :  { %v112_v57 = vadd.f32 %v111_v56, %v110_v55 }
  0xc5   :  { %139 = vpush %v112_v57 }
  0xf6   :  { %s140_s26 = spop %139 }
  0xf7   :  { %s114_s27 = smul.f32 0.00048828125, %s140_s26 }
  0xf9   :  { %v115_v58 = vstv %s114_s27 }
  0xfa   :  { %116 = vst [vmem:[#allocation8] sm:$0xff] %v115_v58 }
  0xfb   :  { %127 = dma.vmem_to_hbm [thread:$0]  %s123_s1, 128, %s125_s25, [#allocation5]  }
  0xfc   :  { %233 = dma.done.wait [#allocation5], 128  }
  0xfd   :  { %234 = vsyncadd [#allocation5], 4294967168 }
  0xfe   :  { %132 = vsyncpa [#allocation4], 1 }
  0xff   :  { %133 = vsyncpa [#allocation7], 1 }
 0x100   :  { %134 = vsyncpa [#allocation5], 1 }

</bundles_post_ra>
